<compile_context>
chip_gen: v7x
topology: tpu7x:2x2x1
jax: 0.10.0
libtpu: 0.0.40
codegen_flags: <defaults>
</compile_context>

<pallas_src>
import functools
import math

import jax
import jax.numpy as jnp
from jax.experimental import pallas as pl
from jax.experimental.pallas import tpu as pltpu

_WTS = (36.64341412, 30.19407855, 106.23704066, 25.58503269, 100.4556983, 167.64383946)
_MIB = 1024 * 1024


def _device_tuning():
    """(n_splits, tile_budget_bytes, vmem_limit_bytes) for the local TPU."""
    kind = ""
    try:
        kind = jax.devices()[0].device_kind.lower()
    except Exception:
        pass
    if any(s in kind for s in ("v7", "tpu7", "7x")):
        # v7x: 2 TensorCores/chip, only 64 MiB VMEM per TC (32 MiB scoped default).
        return 2, 24 * _MIB, 32 * _MIB
    if "v4" in kind or "v5p" in kind:
        # megacore parts: 2 TCs behind one device, 128 MiB VMEM.
        return 2, 48 * _MIB, 64 * _MIB
    if "v5" in kind or "v6" in kind:
        # v5e / v6e: single TC, 128 MiB VMEM.
        return 1, 48 * _MIB, 64 * _MIB
    return 1, 16 * _MIB, 32 * _MIB      # unknown device: stay conservative


def _choose_tiling(mp, lp, bytes_per_elem, budget_bytes, max_tile_l):
    """Pick (tile_l, chunk): lane tile per grid step and inner-loop chunk width."""
    mpad = -(-mp // 8) * 8
    # Inner chunk: keep each (mp, chunk) f32 temporary at <= ~8 vregs so the
    # elementwise chain stays register-resident (no VMEM spills of big temps).
    chunk = max(128, min(512, (8192 // mpad) // 128 * 128))
    chunk = min(chunk, max(128, (max_tile_l // 128) * 128))
    cap = min(max_tile_l, lp, budget_bytes // max(1, 2 * mp * bytes_per_elem))
    tile_l = (cap // chunk) * chunk
    if tile_l < chunk:
        if lp <= chunk:
            return lp, lp               # one full-width block (always legal)
        return chunk, chunk
    return tile_l, chunk


def _bce_partial_sum_kernel(pred_ref, tgt_ref, coeff_ref, out_ref, acc_ref, *,
                            n_l_blocks, tile_l, chunk, rem, skip_possible):
    """Accumulate BCE-with-logits loss over the lane tiles owned by this split."""
    p = pl.program_id(0)                 # parallel split (dual-TC parts)
    i = pl.program_id(1)                 # L-tile index inside this split
    n_inner = pl.num_programs(1)
    lblk = p * n_inner + i               # global L-block index

    @pl.when(i == 0)
    def _init():
        acc_ref[...] = jnp.zeros_like(acc_ref)

    mp = pred_ref.shape[0]
    n_chunks = tile_l // chunk
    mask_needed = rem != tile_l          # only the ragged-tail configuration
    inv255 = 1.0 / 255.0

    def _accumulate():
        # Hoist loop-invariant broadcasts (JAX does not CSE broadcast_in_dim).
        coeff = jnp.broadcast_to(coeff_ref[...].astype(jnp.float32), (mp, chunk))
        if mask_needed:
            lane = jax.lax.broadcasted_iota(jnp.int32, (mp, chunk), 1)
            limit = jnp.where(lblk == n_l_blocks - 1, rem, tile_l)

        def body(j, part):
            off = j * chunk
            if not isinstance(off, int):
                off = pl.multiple_of(off, chunk)
            x = pred_ref[:, pl.ds(off, chunk)].astype(jnp.float32)   # logits
            r = tgt_ref[:, pl.ds(off, chunk)].astype(jnp.float32)    # raw target in [0,255]
            # Numerically-stable BCE-with-logits with pos_weight (matches PyTorch):
            #   sp = softplus(-x);  loss = x + sp + r * (coeff*sp - x/255)
            #   (== (1-t)*x + (1 + (pw-1)*t)*sp  with t = r/255, coeff = (pw-1)/255)
            sp = jnp.maximum(-x, 0.0) + jnp.log1p(jnp.exp(-jnp.abs(x)))
            loss = (x + sp) + r * (coeff * sp - x * inv255)
            if mask_needed:
                loss = jnp.where(lane + off < limit, loss, 0.0)
            return part + loss

        init = jnp.zeros((mp, chunk), jnp.float32)
        if n_chunks == 1:
            part = body(0, init)
        else:
            part = jax.lax.fori_loop(0, n_chunks, body, init)
        acc_ref[...] += part             # one small (mp, chunk) update per step

    if skip_possible:
        pl.when(lblk < n_l_blocks)(_accumulate)
    else:
        _accumulate()

    @pl.when(i == n_inner - 1)
    def _finalize():
        out_ref[0, 0] = jnp.sum(acc_ref[...])


def my_loss_pallas(pred, target, loss_weight=1.0, reduction='mean', *,
                   max_tile_l=65536, n_splits=None):
    """pred: (N, C, H, W) logits (f32 or bf16); target: (N, H, W, C) in [0, 255]
    (float or uint8 mask)."""
    N, C, H, W = pred.shape
    assert target.shape == (N, H, W, C) and target.size > 0

    # NHWC -> NCHW relayout of the (1-byte) target, then flatten to a lane-dense
    # 2D slab shared with pred.
    # TODO(synk): fuse this relayout into the kernel DMA / upstream pipeline; it
    # costs one extra HBM read+write of target (~2 B/elem).
    M, L = N * C, H * W
    tgt_nchw = jnp.transpose(target, (0, 3, 1, 2))

    # Fold a factor of the spatial dim into the rows so the sublane dim is
    # 8-aligned (e.g. 12 rows -> 24); pure reshape of the flat NCHW buffer.
    k = 8 // math.gcd(M, 8)
    if k > 1 and L % k != 0:
        k = 1
    Mp, Lp = M * k, L // k
    pred2d = pred.reshape(Mp, Lp)
    tgt2d = tgt_nchw.reshape(Mp, Lp)

    # Per-channel pos_weight: wts for the first 6 channels, baseline 10 beyond.
    pw = jnp.full((C,), 10.0, jnp.float32)
    nw = min(C, len(_WTS))
    pw = pw.at[:nw].set(jnp.asarray(_WTS[:nw], jnp.float32))
    # Per-row coefficient (pw - 1)/255: kernel computes coeff * raw_target.
    coeff_col = jnp.tile(jnp.repeat((pw - 1.0) * (1.0 / 255.0), k), (N,)).reshape(Mp, 1)

    auto_splits, tile_budget, vmem_limit = _device_tuning()
    if n_splits is None:
        n_splits = auto_splits

    bytes_per_elem = pred2d.dtype.itemsize + tgt2d.dtype.itemsize
    tile_l, chunk = _choose_tiling(Mp, Lp, bytes_per_elem, tile_budget, max_tile_l)
    n_l_blocks = pl.cdiv(Lp, tile_l)
    rem = Lp - (n_l_blocks - 1) * tile_l            # valid lanes in last block
    n_splits = max(1, min(n_splits, n_l_blocks))
    n_inner = pl.cdiv(n_l_blocks, n_splits)
    skip_possible = n_splits * n_inner != n_l_blocks

    def _lmap(p, i):
        # Clamp so the (skipped) tail step of a split never DMAs out of bounds.
        return (0, jnp.minimum(p * n_inner + i, n_l_blocks - 1))

    kernel = functools.partial(
        _bce_partial_sum_kernel, n_l_blocks=n_l_blocks, tile_l=tile_l,
        chunk=chunk, rem=rem, skip_possible=skip_possible)

    partials = pl.pallas_call(
        kernel,
        out_shape=jax.ShapeDtypeStruct((n_splits, 1), jnp.float32),
        grid=(n_splits, n_inner),
        in_specs=[
            pl.BlockSpec((Mp, tile_l), _lmap),
            pl.BlockSpec((Mp, tile_l), _lmap),
            pl.BlockSpec((Mp, 1), lambda p, i: (0, 0)),
        ],
        out_specs=pl.BlockSpec((1, 1), lambda p, i: (p, 0),
                               memory_space=pltpu.SMEM),
        scratch_shapes=[pltpu.VMEM((Mp, chunk), jnp.float32)],
        compiler_params=pltpu.CompilerParams(
            # TODO(synk): on v7x verify the size-2 "parallel" axis shards across
            # both TensorCores (else switch to pltpu.CORE_PARALLEL / core_map).
            dimension_semantics=("parallel", "arbitrary"),
            vmem_limit_bytes=vmem_limit),
    )(pred2d, tgt2d, coeff_col)

    total = jnp.sum(partials)
    if reduction == 'mean':
        loss = total / float(M * L)
    elif reduction == 'sum':
        loss = total
    else:
        # TODO(synk): reduction='none' (per-element loss map), `weight` and
        # `avg_factor` from @weighted_loss are not implemented.
        raise NotImplementedError("reduction='none' not implemented")
    return loss_weight * loss


def _reference_jax(pred, target, loss_weight=1.0, reduction='mean'):
    # Plain-JAX reference mirroring torch F.binary_cross_entropy_with_logits.
    t = jnp.transpose(target, (0, 3, 1, 2)).astype(jnp.float32) / 255.0
    x = pred.astype(jnp.float32)
    C = pred.shape[1]
    pw = jnp.full((C,), 10.0, jnp.float32)
    nw = min(C, len(_WTS))
    pw = pw.at[:nw].set(jnp.asarray(_WTS[:nw], jnp.float32)).reshape(1, C, 1, 1)
    lw = 1.0 + (pw - 1.0) * t
    loss = (1.0 - t) * x + lw * (jnp.maximum(-x, 0.0) + jnp.log1p(jnp.exp(-jnp.abs(x))))
    red = jnp.mean(loss) if reduction == 'mean' else jnp.sum(loss)
    return loss_weight * red


if __name__ == "__main__":
    key = jax.random.PRNGKey(0)
    k1, k2, k3, k4, k5, k6 = jax.random.split(key, 6)

    # Case 1: uint8 mask target, default tiling (single full-width block).
    N, C, H, W = 2, 6, 16, 16
    pred = jax.random.normal(k1, (N, C, H, W), jnp.float32) * 2.0              # logits, NCHW
    target = jax.random.randint(k2, (N, H, W, C), 0, 256, jnp.int32).astype(jnp.uint8)
    out = jax.block_until_ready(my_loss_pallas(pred, target, loss_weight=1.0))
    ref = _reference_jax(pred, target, loss_weight=1.0)
    assert jnp.allclose(out, ref, rtol=5e-5, atol=5e-5), (out, ref)

    # Case 2: float target, forced small lane tile + 2 splits -> several grid
    # steps, a masked (ragged) tail block and a skipped clamped tail step.
    N2, C2, H2, W2 = 2, 6, 16, 40
    pred2 = jax.random.normal(k3, (N2, C2, H2, W2), jnp.float32) * 2.0
    target2 = (jax.random.uniform(k4, (N2, H2, W2, C2)) * 255.0).astype(jnp.float32)
    out2 = jax.block_until_ready(my_loss_pallas(pred2, target2, max_tile_l=128, n_splits=2))
    ref2 = _reference_jax(pred2, target2)
    assert jnp.allclose(out2, ref2, rtol=5e-5, atol=5e-5), (out2, ref2)

    # Case 3: bf16 logits, uint8 target, full-width (non-128-multiple) block,
    # reduction='sum' override.
    N3, C3, H3, W3 = 2, 6, 24, 20
    pred3 = (jax.random.normal(k5, (N3, C3, H3, W3), jnp.float32) * 2.0).astype(jnp.bfloat16)
    target3 = jax.random.randint(k6, (N3, H3, W3, C3), 0, 256, jnp.int32).astype(jnp.uint8)
    out3 = jax.block_until_ready(
        my_loss_pallas(pred3, target3, loss_weight=0.5, reduction='sum'))
    ref3 = _reference_jax(pred3, target3, loss_weight=0.5, reduction='sum')
    assert jnp.allclose(out3, ref3, rtol=5e-5, atol=5e-5), (out3, ref3)

    print("KERNEL_OK")
</pallas_src>

<mosaic_0001>
module attributes {stable_mosaic.version = 11 : i64} {
  func.func @_bce_partial_sum_kernel(%arg0: i32, %arg1: i32, %arg2: memref<24x128xf32, #tpu.memory_space<vmem>>, %arg3: memref<24x128xi8, #tpu.memory_space<vmem>>, %arg4: memref<24x1xf32, #tpu.memory_space<vmem>>, %arg5: memref<1x1xf32, #tpu.memory_space<smem>>, %arg6: memref<24x128xf32, #tpu.memory_space<vmem>>) attributes {dimension_semantics = [#tpu.dimension_semantics<parallel>, #tpu.dimension_semantics<arbitrary>], iteration_bounds = array<i64: 1, 1>, scalar_prefetch = 0 : i64, scratch_operands = 1 : i64, tpu.core_type = #tpu.core_type<tc>, window_params = [{transform_indices = @transform_0, window_bounds = array<i64: 24, 128>}, {transform_indices = @transform_1, window_bounds = array<i64: 24, 128>}, {pipeline_mode = #tpu.pipeline_mode<synchronous>, transform_indices = @transform_2, window_bounds = array<i64: 24, 1>}, {transform_indices = @transform_3, window_bounds = array<i64: 1, 1>}]} {
    %c0_i32 = arith.constant 0 : i32
    %0 = arith.cmpi eq, %arg1, %c0_i32 : i32
    %1 = arith.extui %0 : i1 to i32
    %c0_i32_0 = arith.constant 0 : i32
    %2 = arith.cmpi ne, %1, %c0_i32_0 : i32
    scf.if %2 {
      %cst_16 = arith.constant 0.000000e+00 : f32
      %34 = vector.broadcast %cst_16 : f32 to vector<24x128xf32>
      %c0_17 = arith.constant 0 : index
      %c0_18 = arith.constant 0 : index
      %35 = vector.load %arg6[%c0_17, %c0_18] : memref<24x128xf32, #tpu.memory_space<vmem>>, vector<24x128xf32>
      tpu.vector_store %arg6[%c0_17, %c0_18], %34 {strides = array<i32>} : memref<24x128xf32, #tpu.memory_space<vmem>>, vector<24x128xf32>,
    } else {
    }
    %c0 = arith.constant 0 : index
    %c0_1 = arith.constant 0 : index
    %3 = vector.load %arg4[%c0, %c0_1] : memref<24x1xf32, #tpu.memory_space<vmem>>, vector<24x1xf32>
    %4 = vector.shape_cast %3 : vector<24x1xf32> to vector<24x1xf32>
    %5 = vector.broadcast %4 : vector<24x1xf32> to vector<24x128xf32>
    %cst = arith.constant 0.000000e+00 : f32
    %6 = vector.broadcast %cst : f32 to vector<24x128xf32>
    %c0_2 = arith.constant 0 : index
    %c0_3 = arith.constant 0 : index
    %7 = vector.load %arg2[%c0_2, %c0_3] : memref<24x128xf32, #tpu.memory_space<vmem>>, vector<24x128xf32>
    %c0_4 = arith.constant 0 : index
    %c0_5 = arith.constant 0 : index
    %8 = vector.load %arg3[%c0_4, %c0_5] : memref<24x128xi8, #tpu.memory_space<vmem>>, vector<24x128xi8>
    %9 = arith.uitofp %8 : vector<24x128xi8> to vector<24x128xf32>
    %cst_6 = arith.constant 0.000000e+00 : f32
    %10 = vector.broadcast %cst_6 : f32 to vector<24x128xf32>
    %11 = arith.subf %10, %7 : vector<24x128xf32>
    %cst_7 = arith.constant 0.000000e+00 : f32
    %12 = vector.broadcast %cst_7 : f32 to vector<24x128xf32>
    %13 = arith.maximumf %11, %12 : vector<24x128xf32>
    %14 = math.absf %7 : vector<24x128xf32>
    %cst_8 = arith.constant 0.000000e+00 : f32
    %15 = vector.broadcast %cst_8 : f32 to vector<24x128xf32>
    %16 = arith.subf %15, %14 : vector<24x128xf32>
    %17 = math.exp %16 : vector<24x128xf32>
    %18 = math.log1p %17 : vector<24x128xf32>
    %19 = arith.addf %13, %18 : vector<24x128xf32>
    %20 = arith.addf %7, %19 : vector<24x128xf32>
    %21 = arith.mulf %5, %19 : vector<24x128xf32>
    %cst_9 = arith.constant 0.00392156886 : f32
    %22 = vector.broadcast %cst_9 : f32 to vector<24x128xf32>
    %23 = arith.mulf %7, %22 : vector<24x128xf32>
    %24 = arith.subf %21, %23 : vector<24x128xf32>
    %25 = arith.mulf %9, %24 : vector<24x128xf32>
    %26 = arith.addf %20, %25 : vector<24x128xf32>
    %27 = arith.addf %6, %26 : vector<24x128xf32>
    %c0_10 = arith.constant 0 : index
    %c0_11 = arith.constant 0 : index
    %28 = vector.load %arg6[%c0_10, %c0_11] : memref<24x128xf32, #tpu.memory_space<vmem>>, vector<24x128xf32>
    %29 = arith.addf %28, %27 : vector<24x128xf32>
    %c0_12 = arith.constant 0 : index
    %c0_13 = arith.constant 0 : index
    %30 = vector.load %arg6[%c0_12, %c0_13] : memref<24x128xf32, #tpu.memory_space<vmem>>, vector<24x128xf32>
    tpu.vector_store %arg6[%c0_12, %c0_13], %29 {strides = array<i32>} : memref<24x128xf32, #tpu.memory_space<vmem>>, vector<24x128xf32>,
    %c0_i32_14 = arith.constant 0 : i32
    %31 = arith.cmpi eq, %arg1, %c0_i32_14 : i32
    %32 = arith.extui %31 : i1 to i32
    %c0_i32_15 = arith.constant 0 : i32
    %33 = arith.cmpi ne, %32, %c0_i32_15 : i32
    scf.if %33 {
      %c0_16 = arith.constant 0 : index
      %c0_17 = arith.constant 0 : index
      %34 = vector.load %arg6[%c0_16, %c0_17] : memref<24x128xf32, #tpu.memory_space<vmem>>, vector<24x128xf32>
      %35 = vector.shape_cast %34 : vector<24x128xf32> to vector<1x24x128xf32>
      %cst_18 = arith.constant dense<0.000000e+00> : vector<1xf32>
      %36 = vector.multi_reduction <add>, %35, %cst_18 [1, 2] : vector<1x24x128xf32> to vector<1xf32>
      %37 = vector.shape_cast %36 : vector<1xf32> to vector<1x1x1xf32>
      %38 = vector.extract %37[0, 0, 0] : f32 from vector<1x1x1xf32>
      %c0_19 = arith.constant 0 : index
      %c0_20 = arith.constant 0 : index
      %39 = memref.load %arg5[%c0_19, %c0_20] : memref<1x1xf32, #tpu.memory_space<smem>>
      memref.store %38, %arg5[%c0_19, %c0_20] : memref<1x1xf32, #tpu.memory_space<smem>>
    } else {
    }
    return
  }
  func.func @transform_0(%arg0: i32, %arg1: i32) -> (i32, i32) {
    %c1_i32 = arith.constant 1 : i32
    %0 = arith.muli %arg0, %c1_i32 : i32
    %1 = arith.addi %0, %arg1 : i32
    %c0_i32 = arith.constant 0 : i32
    %2 = arith.minsi %1, %c0_i32 : i32
    %c0_i32_0 = arith.constant 0 : i32
    %c0_i32_1 = arith.constant 0 : i32
    return %c0_i32_0, %2 : i32, i32
  }
  func.func @transform_1(%arg0: i32, %arg1: i32) -> (i32, i32) {
    %c1_i32 = arith.constant 1 : i32
    %0 = arith.muli %arg0, %c1_i32 : i32
    %1 = arith.addi %0, %arg1 : i32
    %c0_i32 = arith.constant 0 : i32
    %2 = arith.minsi %1, %c0_i32 : i32
    %c0_i32_0 = arith.constant 0 : i32
    %c0_i32_1 = arith.constant 0 : i32
    return %c0_i32_0, %2 : i32, i32
  }
  func.func @transform_2(%arg0: i32, %arg1: i32) -> (i32, i32) {
    %c0_i32 = arith.constant 0 : i32
    %c0_i32_0 = arith.constant 0 : i32
    %c0_i32_1 = arith.constant 0 : i32
    return %c0_i32, %c0_i32_0 : i32, i32
  }
  func.func @transform_3(%arg0: i32, %arg1: i32) -> (i32, i32) {
    %c0_i32 = arith.constant 0 : i32
    %c0_i32_0 = arith.constant 0 : i32
    return %arg0, %c0_i32 : i32, i32
  }
}

</mosaic_0001>

<bundles_post_ra>
// kernel: tpu_custom_call.1
= control target key start
LH: loop header
LB: loop body
LE: loop exit
PB: predicated region body
PF: predicated region fallthrough
CT: control target
= control target key end

     0   :  { %8 = vsyncpa [#allocation4], 0  ;;  %s375_s0 = inlined_call_operand.vmem [shape: f32[24,128], index: 0, kind: input, shape index: {}]   ;;  %s376_s1 = inlined_call_operand.hbm [shape: u8[24,128], index: 1, kind: input, shape index: {}]   ;;  %s377_s2 = inlined_call_operand.vmem [shape: f32[24,1], index: 2, kind: input, shape index: {}]   ;;  %s378_s3 = inlined_call_operand.hbm [shape: f32[1,1], index: 3, kind: output, shape index: {}]  }
   0x1   :  { %9 = vsyncpa [#allocation5], 0  ;;  %s284_s12 = smov [#allocation3]   ;;  %s248_s16 = scalar_lea.hbm %s376_s1, 96 }
   0x2   :  { %s32_s13 = sshll.u32 %s284_s12, 4  ;;  %p249_p0 = scmp.ne.s32.totalorder %s376_s1, %s248_s16  ;;  %s33_s13 = int_to_ptr.vmem [resolvable:$true] %s32_s13 }
   0x3   :  { %p252_p1 = scmp.lt.u32.totalorder %s248_s16, %s376_s1 }
   0x5   :  { %p254_p2 = pnand %p252_p1, %p249_p0 }
   0x7   :  { %257 = shalt.err (!%p254_p2)
}
   0x8   :  { %s258_s21 = scalar_lea.vmem %s33_s13, 96  ;;  %p263_p4 = scmp.lt.s32.totalorder %s33_s13, %s33_s13 }
   0x9   :  { %p259_p3 = scmp.ne.s32.totalorder %s33_s13, %s258_s21  ;;  %p264_p5 = scmp.lt.s32.totalorder %s258_s21, %s258_s21 }
   0xb   :  { %p265_p6 = por %p264_p5, %p263_p4 }
   0xd   :  { %p266_p7 = pnand %p265_p6, %p259_p3 }
   0xf   :  { %269 = shalt.err (!%p266_p7)
}
  0x10   :  { %s285_s22 = smov 32   ;;  %s286_s23 = smov 2  }
  0x11   :  { %38 = dma.hbm_to_vmem [thread:$0]  %s376_s1, 96, %s33_s13, [#allocation4], %s285_s22, %s285_s22, %s286_s23  }
  0x12   :  { %280 = dma.done.wait [#allocation4], 96  }
  0x13   :  { %281 = vsyncadd [#allocation4], 4294967200  ;;  %v287_v0 = vmov 0   ;;  %v71_v1 = vld [vmem:[%s377_s2] sm:$0xff]  ;;  %v73_v2 = vld [vmem:[%s377_s2 + $0x10] sm:$0xff]  ;;  %s270_s11 = scalar_lea.hbm %s378_s3, 16 }
  0x14   :  { %234 = vset.pattern.permute.xlu0 %v287_v0  ;;  %235 = vset.pattern.permute.xlu1 %v287_v0  ;;  %v72_v3 = vld [vmem:[%s377_s2 + $0x8] sm:$0xff]  ;;  %v333_v4 = vld [vmem:[%s375_s0] sm:$0xff]  ;;  %v338_v5 = vld [vmem:[%s375_s0 + $0x10] sm:$0xff]  ;;  %p271_p8 = scmp.ne.s32.totalorder %s378_s3, %s270_s11  ;;  %p274_p9 = scmp.lt.u32.totalorder %s270_s11, %s378_s3 }
  0x15   :  { %76 = vperm.xlu0 %234, %v71_v1   ;;  %86 = vperm.xlu1 %235, %v73_v2   ;;  %v110_v6 = vand.u32 2147483647, %v333_v4  ;;  %v112_v7 = vand.u32 2147483647, %v338_v5  ;;  %v345_v8 = vld [vmem:[%s375_s0 + $0x8] sm:$0xff]  ;;  %v104_v31 = vsub.f32 0.0, %v333_v4 }
  0x16   :  { %v111_v10 = vand.u32 2147483647, %v345_v8  ;;  %v106_v33 = vsub.f32 0.0, %v338_v5  ;;  %v224_v41 = vld [vmem:[#allocation3] sm:$0xf]   ;;  %v105_v44 = vsub.f32 0.0, %v345_v8  ;;  %p276_p10 = pnand %p274_p9, %p271_p8 }
  0x17   :  { %v113_v9 = vsub.f32 0.0, %v110_v6  ;;  %v115_v11 = vsub.f32 0.0, %v112_v7  ;;  %v94_v42 = vld [vmem:[#allocation3 + $0x4] sm:$0x3]  ;;  %v107_v43 = vmax.f32 %v104_v31, 0.0  ;;  %v225_v50 = vunpack.c.0.s8 %v224_v41 }
  0x18   :  { %v114_v13 = vsub.f32 0.0, %v111_v10  ;;  %v109_v45 = vmax.f32 %v106_v33, 0.0  ;;  %v97_v51 = vunpack.c.0.s8 %v94_v42  ;;  %v226_v53 = vunpack.c.1.s8 %v224_v41 }
  0x19   :  { %81 = vperm.xlu0 %234, %v72_v3   ;;  %v116_v12 = vmul.f32 1.442695, %v113_v9  ;;  %v120_v14 = vmul.f32 1.442695, %v115_v11  ;;  %v108_v54 = vmax.f32 %v105_v44, 0.0  ;;  %v98_v57 = vand.u32 255, %v225_v50 }
  0x1a   :  { %v118_v15 = vmul.f32 1.442695, %v114_v13  ;;  %v158_v58 = vmul.f32 0.003921569, %v333_v4  ;;  %v100_v59 = vand.u32 255, %v97_v51  ;;  %v99_v0 = vand.u32 255, %v226_v53 }
  0x1b   :  { %236 = vpow2.f32 %v116_v12  ;;  %v160_v60 = vmul.f32 0.003921569, %v338_v5  ;;  %v159_v3 = vmul.f32 0.003921569, %v345_v8  ;;  %v101_v6 = vcvt.s32.f32 %v98_v57 }
  0x1c   :  { %238 = vpow2.f32 %v120_v14  ;;  %v103_v9 = vcvt.s32.f32 %v100_v59  ;;  %v102_v12 = vcvt.s32.f32 %v99_v0 }
  0x1d   :  { %240 = vpow2.f32 %v118_v15 }
  0x25   :  { %v237_v16 = vpop.eup %236 }
  0x26   :  { %v239_v17 = vpop.eup %238  ;;  %v122_v18 = vadd.f32 1.0, %v237_v16  ;;  %v125_v22 = vmul.f32 -0.5, %v237_v16  ;;  %v128_v29 = vand.u32 2147483647, %v237_v16 }
  0x27   :  { %v140_v19 = vadd.f32 1.0, %v239_v17  ;;  %v241_v20 = vpop.eup %240  ;;  %v143_v23 = vmul.f32 -0.5, %v239_v17  ;;  %v146_v30 = vand.u32 2147483647, %v239_v17 }
  0x28   :  { %242 = vlog2.f32 %v122_v18  ;;  %v131_v21 = vadd.f32 1.0, %v241_v20  ;;  %v134_v24 = vmul.f32 -0.5, %v241_v20  ;;  %v126_v26 = vadd.f32 1.0, %v125_v22 }
  0x29   :  { %244 = vlog2.f32 %v140_v19  ;;  %v144_v27 = vadd.f32 1.0, %v143_v23  ;;  %vm129_vm0 = vcmp.lt.f32.partialorder %v128_v29, 0.0004427343  ;;  %v137_v39 = vand.u32 2147483647, %v241_v20 }
  0x2a   :  { %246 = vlog2.f32 %v131_v21  ;;  %v135_v32 = vadd.f32 1.0, %v134_v24  ;;  %v127_v35 = vmul.f32 %v237_v16, %v126_v26  ;;  %vm350_vm1 = vcmp.lt.f32.partialorder %v146_v30, 0.0004427343 }
  0x2b   :  { %v145_v37 = vmul.f32 %v239_v17, %v144_v27  ;;  %vm138_vm2 = vcmp.lt.f32.partialorder %v137_v39, 0.0004427343 }
  0x2c   :  { %v136_v48 = vmul.f32 %v241_v20, %v135_v32 }
  0x32   :  { %v243_v25 = vpop.eup %242 }
  0x33   :  { %v245_v28 = vpop.eup %244  ;;  %v124_v34 = vmul.f32 0.6931472, %v243_v25 }
  0x34   :  { %v142_v36 = vmul.f32 0.6931472, %v245_v28  ;;  %v247_v38 = vpop.eup %246 }
  0x35   :  { %v130_v46 = vsel %vm129_vm0, %v127_v35, %v124_v34  ;;  %v133_v47 = vmul.f32 0.6931472, %v247_v38 }
  0x36   :  { %v148_v49 = vsel %vm350_vm1, %v145_v37, %v142_v36  ;;  %v149_v52 = vadd.f32 %v130_v46, %v107_v43 }
  0x37   :  { %v151_v55 = vadd.f32 %v148_v49, %v109_v45  ;;  %v139_v56 = vsel %vm138_vm2, %v136_v48, %v133_v47 }
  0x38   :  { %v150_v1 = vadd.f32 %v139_v56, %v108_v54  ;;  %v152_v14 = vadd.f32 %v149_v52, %v333_v4 }
  0x39   :  { %v154_v18 = vadd.f32 %v151_v55, %v338_v5 }
  0x3a   :  { %v153_v15 = vadd.f32 %v150_v1, %v345_v8 }
  0x94   :  { %v77_v61 = vpop.permute.xlu0 %76  ;;  %v87_v62 = vpop.permute.xlu1 %86 }
  0x95   :  { %v155_v63 = vmul.f32 %v149_v52, %v77_v61  ;;  %v157_v2 = vmul.f32 %v151_v55, %v87_v62 }
  0x97   :  { %v161_v7 = vsub.f32 %v155_v63, %v158_v58  ;;  %v163_v10 = vsub.f32 %v157_v2, %v160_v60 }
  0x98   :  { %v82_v11 = vpop.permute.xlu0 %81 }
  0x99   :  { %v156_v13 = vmul.f32 %v150_v1, %v82_v11  ;;  %v164_v16 = vmul.f32 %v161_v7, %v101_v6  ;;  %v166_v19 = vmul.f32 %v163_v10, %v103_v9 }
  0x9b   :  { %v162_v17 = vsub.f32 %v156_v13, %v159_v3  ;;  %v167_v21 = vadd.f32 %v164_v16, %v152_v14  ;;  %v169_v23 = vadd.f32 %v166_v19, %v154_v18 }
  0x9d   :  { %v165_v20 = vmul.f32 %v162_v17, %v102_v12 }
  0x9f   :  { %v168_v22 = vadd.f32 %v165_v20, %v153_v15 }
  0xa1   :  { %v188_v24 = vadd.f32 %v168_v22, %v167_v21 }
  0xa3   :  { %v189_v25 = vadd.f32 %v188_v24, %v169_v23 }
  0xa5   :  { %190 = vadd.xlane.f32.xlu1 %v189_v25 }
 0x132   :  { %v191_v26 = vpop.xlane.xlu1 %190 }
 0x133   :  { %v192_v27 = vrot.slane %v191_v26, 4 }
 0x135   :  { %v193_v28 = vadd.f32 %v192_v27, %v191_v26 }
 0x137   :  { %v194_v29 = vrot.slane %v193_v28, 2 }
 0x139   :  { %v195_v30 = vadd.f32 %v194_v29, %v193_v28 }
 0x13b   :  { %v196_v4 = vrot.slane %v195_v30, 1 }
 0x13d   :  { %v197_v31 = vadd.f32 %v196_v4, %v195_v30 }
 0x13f   :  { %227 = vpush %v197_v31 }
 0x170   :  { %s228_s0 = spop %227 }
 0x171   :  { %200 = sst [smem:[#allocation6]] %s228_s0 }
 0x172   :  { %279 = shalt.err (!%p276_p10)
}
 0x173   :  { %s288_s16 = smov [#allocation6]  }
 0x174   :  { %208 = dma.smem_to_hbm %s288_s16, 16, %s378_s3, [#allocation5]  }
 0x175   :  { %282 = dma.done.wait [#allocation5], 16  }
 0x176   :  { %283 = vsyncadd [#allocation5], 4294967280 }
 0x177   :  { %212 = sfence }
 0x178   :  { %213 = vsyncpa [#allocation4], 1 }
 0x179   :  { %214 = vsyncpa [#allocation5], 1 }

</bundles_post_ra>
